<compile_context>
chip_gen: v7x
topology: tpu7x:2x2x1
jax: 0.10.0
libtpu: 0.0.40
codegen_flags: <defaults>
</compile_context>

<pallas_src>
import jax
import jax.numpy as jnp
from jax import lax
from jax.experimental import pallas as pl
from jax.experimental.pallas import tpu as pltpu


# ----------------------------------------------------------------------------
# Model dimensions (synthetic, deterministic "l1_model" / "l2_model" configs).
# l2_model.num_visible must equal l1_model.num_hidden, exactly as the PyTorch
# module implicitly requires.
# ----------------------------------------------------------------------------
NUM_VISIBLE_1 = 32   # l1_model.num_visible
NUM_HIDDEN_1  = 64   # l1_model.num_hidden == l2_model.num_visible
NUM_HIDDEN_2  = 32   # l2_model.num_hidden
N_HID         = 16   # n_hid
N_LIN         = 8    # n_lin

CHUNK  = 256         # lane width per inner chunk (one 256-wide MXU N push on v6e/v7x)
MAX_TM = 4096        # cap on the per-grid-step batch tile


def _round_up(x, m):
    return ((x + m - 1) // m) * m


def _pick_tile(batch):
    """Adaptive batch tile: big enough to amortize per-grid-step overhead,
    small enough that large batches keep >= 2 grid steps (v7x megacore)."""
    tm = min(MAX_TM, _round_up(batch, CHUNK))
    if batch >= 2 * CHUNK:
        tm = min(tm, _round_up((batch + 1) // 2, CHUNK))
    return tm


def _sigmoid(x):
    # tanh-form sigmoid: a single EUP push per element, no full-precision
    # divide (mathematically identical to 1/(1+exp(-x))).
    return 0.5 * (jnp.tanh(0.5 * x) + 1.0)


def _chain(x, w1, b1, w2, b2, wh, bh, wf, bf):
    """Full MLP chain on one (32, CHUNK) batch chunk (batch on lanes).

    Weights are PyTorch-layout (out, in); biases (out, 1); the final two
    linear layers are pre-fused into (wf, bf).
    """
    h = _sigmoid(jnp.dot(w1, x, preferred_element_type=jnp.float32) + b1)   # (64, C)  l1
    h = _sigmoid(jnp.dot(w2, h, preferred_element_type=jnp.float32) + b2)   # (32, C)  l2
    h = _sigmoid(jnp.dot(wh, h, preferred_element_type=jnp.float32) + bh)   # (16, C)  hid
    return jnp.dot(wf, h, preferred_element_type=jnp.float32) + bf          # (1, C)   lin+out


def combined_kernel(x_ref,
                    w1_ref, b1_ref, w2_ref, b2_ref, wh_ref, bh_ref,
                    wf_ref, bf_ref,
                    out_ref):
    """One (32, TM) batch tile of the full MLP; everything stays in VMEM."""
    params = (w1_ref[...], b1_ref[...], w2_ref[...], b2_ref[...],
              wh_ref[...], bh_ref[...], wf_ref[...], bf_ref[...])
    n_chunks = out_ref.shape[1] // CHUNK   # static: TM is a multiple of CHUNK

    def body(c, carry):
        off = pl.multiple_of(c * CHUNK, CHUNK)
        x = x_ref[:, pl.ds(off, CHUNK)].astype(jnp.float32)   # cast on the VPU
        y = _chain(x, *params)                                # (1, CHUNK)
        out_ref[:, pl.ds(off, CHUNK)] = y.astype(out_ref.dtype)
        return carry

    lax.fori_loop(0, n_chunks, body, None, unroll=min(2, n_chunks))


def _forward(inputs, params):
    """Forward pass matching Combined_Regression_HL.forward."""
    (w1, b1, w2, b2, wh, bh, wl, bl, wo, bo) = params

    # Exact fusion of the last two linear layers (no nonlinearity in between).
    wf = jnp.dot(wo, wl)        # (1, N_HID)
    bf = jnp.dot(wo, bl) + bo   # (1, 1)

    x = inputs.reshape(-1, NUM_VISIBLE_1)   # inputs.view(-1, num_visible)
    batch = x.shape[0]
    xt = x.T                                # (32, batch): features on sublanes, batch on lanes

    tm = _pick_tile(batch)
    grid = pl.cdiv(batch, tm)               # partial last block handled by Pallas masking
    kernel_params = (w1, b1, w2, b2, wh, bh, wf, bf)

    def full_spec(p):
        # Whole (tiny) parameter tensor resident in VMEM for every grid step.
        return pl.BlockSpec(p.shape, lambda i: (0, 0))

    out = pl.pallas_call(
        combined_kernel,
        out_shape=jax.ShapeDtypeStruct((1, batch), jnp.float32),
        grid_spec=pltpu.PrefetchScalarGridSpec(
            num_scalar_prefetch=0,
            grid=(grid,),
            in_specs=[pl.BlockSpec((NUM_VISIBLE_1, tm), lambda i: (0, i))]
                     + [full_spec(p) for p in kernel_params],
            out_specs=pl.BlockSpec((1, tm), lambda i: (0, i)),   # lane-dense output
        ),
        compiler_params=pltpu.CompilerParams(
            dimension_semantics=("parallel",)),
    )(xt, *kernel_params)

    # (1, batch) lane-dense output -> (batch, 1), matching the PyTorch module.
    return out.reshape(batch, 1)


combined_regression_hl = jax.jit(_forward)


def init_params(key):
    """Deterministic synthetic parameters in PyTorch layout: W (out, in), b (out, 1)."""
    keys = jax.random.split(key, 10)

    def linear(kw, kb, fan_in, fan_out):
        bound = float(fan_in) ** -0.5
        w = jax.random.uniform(kw, (fan_out, fan_in), jnp.float32, -bound, bound)
        b = jax.random.uniform(kb, (fan_out, 1), jnp.float32, -bound, bound)
        return w, b

    w1, b1 = linear(keys[0], keys[1], NUM_VISIBLE_1, NUM_HIDDEN_1)   # self.l1
    w2, b2 = linear(keys[2], keys[3], NUM_HIDDEN_1, NUM_HIDDEN_2)    # self.l2
    wh, bh = linear(keys[4], keys[5], NUM_HIDDEN_2, N_HID)           # self.hid
    wl, bl = linear(keys[6], keys[7], N_HID, N_LIN)                  # self.lin
    wo, bo = linear(keys[8], keys[9], N_LIN, 1)                      # self.out
    return (w1, b1, w2, b2, wh, bh, wl, bl, wo, bo)


def reference_forward(inputs, params):
    """Pure-JAX reference for a correctness check."""
    (w1, b1, w2, b2, wh, bh, wl, bl, wo, bo) = params
    x = inputs.reshape(-1, NUM_VISIBLE_1).astype(jnp.float32)
    h = jax.nn.sigmoid(x @ w1.T + b1[:, 0])
    h = jax.nn.sigmoid(h @ w2.T + b2[:, 0])
    h = jax.nn.sigmoid(h @ wh.T + bh[:, 0])
    h = h @ wl.T + bl[:, 0]
    return h @ wo.T + bo[:, 0]


if __name__ == "__main__":
    key = jax.random.PRNGKey(0)
    k_in, k_par = jax.random.split(key)

    # Example input: (2, 8, 32) -> view(-1, 32) gives a batch of 16 rows.
    inputs = jax.random.normal(k_in, (2, 8, NUM_VISIBLE_1), dtype=jnp.float32)
    params = init_params(k_par)

    y = combined_regression_hl(inputs, params)
    y = jax.block_until_ready(y)

    y_ref = reference_forward(inputs, params)
    assert y.shape == (16, 1)
    assert jnp.allclose(y, y_ref, atol=1e-4, rtol=1e-4), \
        float(jnp.max(jnp.abs(y - y_ref)))

    print("KERNEL_OK")
</pallas_src>

<mosaic_0001>
module attributes {stable_mosaic.version = 11 : i64} {
  func.func @combined_kernel(%arg0: i32, %arg1: memref<32x256xf32, #tpu.memory_space<vmem>>, %arg2: memref<64x32xf32, #tpu.memory_space<vmem>>, %arg3: memref<64x1xf32, #tpu.memory_space<vmem>>, %arg4: memref<32x64xf32, #tpu.memory_space<vmem>>, %arg5: memref<32x1xf32, #tpu.memory_space<vmem>>, %arg6: memref<16x32xf32, #tpu.memory_space<vmem>>, %arg7: memref<16x1xf32, #tpu.memory_space<vmem>>, %arg8: memref<1x16xf32, #tpu.memory_space<vmem>>, %arg9: memref<1x1xf32, #tpu.memory_space<vmem>>, %arg10: memref<1x256xf32, #tpu.memory_space<vmem>>) attributes {dimension_semantics = [#tpu.dimension_semantics<parallel>], iteration_bounds = array<i64: 1>, scalar_prefetch = 0 : i64, scratch_operands = 0 : i64, tpu.core_type = #tpu.core_type<tc>, window_params = [{transform_indices = @transform_0, window_bounds = array<i64: 32, 256>}, {pipeline_mode = #tpu.pipeline_mode<synchronous>, transform_indices = @transform_1, window_bounds = array<i64: 64, 32>}, {pipeline_mode = #tpu.pipeline_mode<synchronous>, transform_indices = @transform_2, window_bounds = array<i64: 64, 1>}, {pipeline_mode = #tpu.pipeline_mode<synchronous>, transform_indices = @transform_3, window_bounds = array<i64: 32, 64>}, {pipeline_mode = #tpu.pipeline_mode<synchronous>, transform_indices = @transform_4, window_bounds = array<i64: 32, 1>}, {pipeline_mode = #tpu.pipeline_mode<synchronous>, transform_indices = @transform_5, window_bounds = array<i64: 16, 32>}, {pipeline_mode = #tpu.pipeline_mode<synchronous>, transform_indices = @transform_6, window_bounds = array<i64: 16, 1>}, {pipeline_mode = #tpu.pipeline_mode<synchronous>, transform_indices = @transform_7, window_bounds = array<i64: 1, 16>}, {pipeline_mode = #tpu.pipeline_mode<synchronous>, transform_indices = @transform_8, window_bounds = array<i64: 1, 1>}, {transform_indices = @transform_9, window_bounds = array<i64: 1, 256>}]} {
    %c0 = arith.constant 0 : index
    %c0_0 = arith.constant 0 : index
    %0 = vector.load %arg2[%c0, %c0_0] : memref<64x32xf32, #tpu.memory_space<vmem>>, vector<64x32xf32>
    %c0_1 = arith.constant 0 : index
    %c0_2 = arith.constant 0 : index
    %1 = vector.load %arg3[%c0_1, %c0_2] : memref<64x1xf32, #tpu.memory_space<vmem>>, vector<64x1xf32>
    %c0_3 = arith.constant 0 : index
    %c0_4 = arith.constant 0 : index
    %2 = vector.load %arg4[%c0_3, %c0_4] : memref<32x64xf32, #tpu.memory_space<vmem>>, vector<32x64xf32>
    %c0_5 = arith.constant 0 : index
    %c0_6 = arith.constant 0 : index
    %3 = vector.load %arg5[%c0_5, %c0_6] : memref<32x1xf32, #tpu.memory_space<vmem>>, vector<32x1xf32>
    %c0_7 = arith.constant 0 : index
    %c0_8 = arith.constant 0 : index
    %4 = vector.load %arg6[%c0_7, %c0_8] : memref<16x32xf32, #tpu.memory_space<vmem>>, vector<16x32xf32>
    %c0_9 = arith.constant 0 : index
    %c0_10 = arith.constant 0 : index
    %5 = vector.load %arg7[%c0_9, %c0_10] : memref<16x1xf32, #tpu.memory_space<vmem>>, vector<16x1xf32>
    %c0_11 = arith.constant 0 : index
    %c0_12 = arith.constant 0 : index
    %6 = vector.load %arg8[%c0_11, %c0_12] : memref<1x16xf32, #tpu.memory_space<vmem>>, vector<1x16xf32>
    %c0_13 = arith.constant 0 : index
    %c0_14 = arith.constant 0 : index
    %7 = vector.load %arg9[%c0_13, %c0_14] : memref<1x1xf32, #tpu.memory_space<vmem>>, vector<1x1xf32>
    %c0_i32 = arith.constant 0 : i32
    %c256_i32 = arith.constant 256 : i32
    %8 = arith.muli %c0_i32, %c256_i32 : i32
    %9 = tpu.assume_multiple %8, 256 : i32
    %c0_15 = arith.constant 0 : index
    %10 = arith.index_cast %9 : i32 to index
    %11 = vector.load %arg1[%c0_15, %10] : memref<32x256xf32, #tpu.memory_space<vmem>>, vector<32x256xf32>
    %cst = arith.constant dense<0.000000e+00> : vector<64x256xf32>
    %12 = tpu.matmul %0, %11, %cst {dimension_numbers = #tpu.dot_dimension_numbers<[1], [0], [0], [1], [0, 0, 1, 1], [], []>} : vector<64x32xf32>, vector<32x256xf32>, vector<64x256xf32> -> vector<64x256xf32>
    %13 = vector.broadcast %1 : vector<64x1xf32> to vector<64x256xf32>
    %14 = arith.addf %12, %13 : vector<64x256xf32>
    %cst_16 = arith.constant 5.000000e-01 : f32
    %15 = vector.broadcast %cst_16 : f32 to vector<64x256xf32>
    %16 = arith.mulf %15, %14 : vector<64x256xf32>
    %17 = math.tanh %16 : vector<64x256xf32>
    %cst_17 = arith.constant 1.000000e+00 : f32
    %18 = vector.broadcast %cst_17 : f32 to vector<64x256xf32>
    %19 = arith.addf %17, %18 : vector<64x256xf32>
    %cst_18 = arith.constant 5.000000e-01 : f32
    %20 = vector.broadcast %cst_18 : f32 to vector<64x256xf32>
    %21 = arith.mulf %20, %19 : vector<64x256xf32>
    %cst_19 = arith.constant dense<0.000000e+00> : vector<32x256xf32>
    %22 = tpu.matmul %2, %21, %cst_19 {dimension_numbers = #tpu.dot_dimension_numbers<[1], [0], [0], [1], [0, 0, 1, 1], [], []>} : vector<32x64xf32>, vector<64x256xf32>, vector<32x256xf32> -> vector<32x256xf32>
    %23 = vector.broadcast %3 : vector<32x1xf32> to vector<32x256xf32>
    %24 = arith.addf %22, %23 : vector<32x256xf32>
    %cst_20 = arith.constant 5.000000e-01 : f32
    %25 = vector.broadcast %cst_20 : f32 to vector<32x256xf32>
    %26 = arith.mulf %25, %24 : vector<32x256xf32>
    %27 = math.tanh %26 : vector<32x256xf32>
    %cst_21 = arith.constant 1.000000e+00 : f32
    %28 = vector.broadcast %cst_21 : f32 to vector<32x256xf32>
    %29 = arith.addf %27, %28 : vector<32x256xf32>
    %cst_22 = arith.constant 5.000000e-01 : f32
    %30 = vector.broadcast %cst_22 : f32 to vector<32x256xf32>
    %31 = arith.mulf %30, %29 : vector<32x256xf32>
    %cst_23 = arith.constant dense<0.000000e+00> : vector<16x256xf32>
    %32 = tpu.matmul %4, %31, %cst_23 {dimension_numbers = #tpu.dot_dimension_numbers<[1], [0], [0], [1], [0, 0, 1, 1], [], []>} : vector<16x32xf32>, vector<32x256xf32>, vector<16x256xf32> -> vector<16x256xf32>
    %33 = vector.broadcast %5 : vector<16x1xf32> to vector<16x256xf32>
    %34 = arith.addf %32, %33 : vector<16x256xf32>
    %cst_24 = arith.constant 5.000000e-01 : f32
    %35 = vector.broadcast %cst_24 : f32 to vector<16x256xf32>
    %36 = arith.mulf %35, %34 : vector<16x256xf32>
    %37 = math.tanh %36 : vector<16x256xf32>
    %cst_25 = arith.constant 1.000000e+00 : f32
    %38 = vector.broadcast %cst_25 : f32 to vector<16x256xf32>
    %39 = arith.addf %37, %38 : vector<16x256xf32>
    %cst_26 = arith.constant 5.000000e-01 : f32
    %40 = vector.broadcast %cst_26 : f32 to vector<16x256xf32>
    %41 = arith.mulf %40, %39 : vector<16x256xf32>
    %cst_27 = arith.constant dense<0.000000e+00> : vector<1x256xf32>
    %42 = tpu.matmul %6, %41, %cst_27 {dimension_numbers = #tpu.dot_dimension_numbers<[1], [0], [0], [1], [0, 0, 1, 1], [], []>} : vector<1x16xf32>, vector<16x256xf32>, vector<1x256xf32> -> vector<1x256xf32>
    %43 = vector.broadcast %7 : vector<1x1xf32> to vector<1x256xf32>
    %44 = arith.addf %42, %43 : vector<1x256xf32>
    %c0_28 = arith.constant 0 : index
    %45 = arith.index_cast %9 : i32 to index
    %46 = vector.load %arg10[%c0_28, %45] : memref<1x256xf32, #tpu.memory_space<vmem>>, vector<1x256xf32>
    tpu.vector_store %arg10[%c0_28, %45], %44 {strides = array<i32>} : memref<1x256xf32, #tpu.memory_space<vmem>>, vector<1x256xf32>,
    %c1_i32 = arith.constant 1 : i32
    return
  }
  func.func @transform_0(%arg0: i32) -> (i32, i32) {
    %c0_i32 = arith.constant 0 : i32
    %c0_i32_0 = arith.constant 0 : i32
    return %c0_i32, %arg0 : i32, i32
  }
  func.func @transform_1(%arg0: i32) -> (i32, i32) {
    %c0_i32 = arith.constant 0 : i32
    %c0_i32_0 = arith.constant 0 : i32
    %c0_i32_1 = arith.constant 0 : i32
    return %c0_i32, %c0_i32_0 : i32, i32
  }
  func.func @transform_2(%arg0: i32) -> (i32, i32) {
    %c0_i32 = arith.constant 0 : i32
    %c0_i32_0 = arith.constant 0 : i32
    %c0_i32_1 = arith.constant 0 : i32
    return %c0_i32, %c0_i32_0 : i32, i32
  }
  func.func @transform_3(%arg0: i32) -> (i32, i32) {
    %c0_i32 = arith.constant 0 : i32
    %c0_i32_0 = arith.constant 0 : i32
    %c0_i32_1 = arith.constant 0 : i32
    return %c0_i32, %c0_i32_0 : i32, i32
  }
  func.func @transform_4(%arg0: i32) -> (i32, i32) {
    %c0_i32 = arith.constant 0 : i32
    %c0_i32_0 = arith.constant 0 : i32
    %c0_i32_1 = arith.constant 0 : i32
    return %c0_i32, %c0_i32_0 : i32, i32
  }
  func.func @transform_5(%arg0: i32) -> (i32, i32) {
    %c0_i32 = arith.constant 0 : i32
    %c0_i32_0 = arith.constant 0 : i32
    %c0_i32_1 = arith.constant 0 : i32
    return %c0_i32, %c0_i32_0 : i32, i32
  }
  func.func @transform_6(%arg0: i32) -> (i32, i32) {
    %c0_i32 = arith.constant 0 : i32
    %c0_i32_0 = arith.constant 0 : i32
    %c0_i32_1 = arith.constant 0 : i32
    return %c0_i32, %c0_i32_0 : i32, i32
  }
  func.func @transform_7(%arg0: i32) -> (i32, i32) {
    %c0_i32 = arith.constant 0 : i32
    %c0_i32_0 = arith.constant 0 : i32
    %c0_i32_1 = arith.constant 0 : i32
    return %c0_i32, %c0_i32_0 : i32, i32
  }
  func.func @transform_8(%arg0: i32) -> (i32, i32) {
    %c0_i32 = arith.constant 0 : i32
    %c0_i32_0 = arith.constant 0 : i32
    %c0_i32_1 = arith.constant 0 : i32
    return %c0_i32, %c0_i32_0 : i32, i32
  }
  func.func @transform_9(%arg0: i32) -> (i32, i32) {
    %c0_i32 = arith.constant 0 : i32
    %c0_i32_0 = arith.constant 0 : i32
    return %c0_i32, %arg0 : i32, i32
  }
}

</mosaic_0001>

<bundles_post_ra>
// kernel: _forward.1
= control target key start
LH: loop header
LB: loop body
LE: loop exit
PB: predicated region body
PF: predicated region fallthrough
CT: control target
= control target key end

     0   :  { %s1079_s0 = inlined_call_operand.vmem [shape: f32[32,16], index: 0, kind: input, shape index: {}]   ;;  %s1080_s1 = inlined_call_operand.vmem [shape: f32[64,32], index: 1, kind: input, shape index: {}]   ;;  %s1081_s2 = inlined_call_operand.vmem [shape: f32[64,1], index: 2, kind: input, shape index: {}]   ;;  %s1082_s3 = inlined_call_operand.vmem [shape: f32[32,64], index: 3, kind: input, shape index: {}]   ;;  %s1083_s4 = inlined_call_operand.vmem [shape: f32[32,1], index: 4, kind: input, shape index: {}]   ;;  %s1084_s5 = inlined_call_operand.vmem [shape: f32[16,32], index: 5, kind: input, shape index: {}]   ;;  %s1085_s6 = inlined_call_operand.vmem [shape: f32[16,1], index: 6, kind: input, shape index: {}]   ;;  %s1086_s7 = inlined_call_operand.vmem [shape: f32[1,16], index: 7, kind: input, shape index: {}]   ;;  %s1087_s8 = inlined_call_operand.<no memory space> [shape: f32[1,1], index: 8, kind: input, shape index: {}]   ;;  %s1088_s9 = inlined_call_operand.hbm [shape: f32[1,16], index: 9, kind: output, shape index: {}]  }
   0x1   :  { %v14_v0 = vstv %s1087_s8 }
   0x2   :  { %15 = vst [vmem:[#allocation2] sm:$0x1] %v14_v0 }
   0x3   :  { %16 = vsyncpa [#allocation5], 0  ;;  %v112_v1 = vld [vmem:[#allocation3 + $0x8] sm:$0xff]  ;;  %v114_v2 = vld [vmem:[#allocation3 + $0x18] sm:$0xff]  ;;  %v886_v7 = vmov 0.0   ;;  %v887_v12 = vmov 0  }
   0x4   :  { %v764_v3 = vpack.c.bf16 %v114_v2, %v112_v1  ;;  %v52_v4 = vld [vmem:[%s1079_s0] sm:$0xff]  ;;  %v54_v5 = vld [vmem:[%s1079_s0 + $0x8] sm:$0xff]  ;;  %248 = vmatprep.mubr.f32.mxu0 %v886_v7  ;;  %458 = vmatprep.mubr.f32.mxu1 %v886_v7  ;;  %v56_v10 = vld [vmem:[%s1079_s0 + $0x10] sm:$0xff]  ;;  %vm159_vm0 = vcmask 261120   ;;  %vm381_vm1 = vcmask 523264   ;;  %vm633_vm2 = vcmask 130048  }
   0x5   :  { %v116_v6 = vld [vmem:[#allocation3 + $0x28] sm:$0xff]  ;;  %v766_v8 = vpack.c.bf16 %v54_v5, %v52_v4  ;;  %v118_v9 = vld [vmem:[#allocation3 + $0x38] sm:$0xff]  ;;  %804 = vset.pattern.permute.xlu0 %v887_v12  ;;  %805 = vset.pattern.permute.xlu1 %v887_v12 }
   0x6   :  { %v58_v11 = vld [vmem:[%s1079_s0 + $0x18] sm:$0xff]  ;;  %765 = vmatprep.subr.bf16.mxu0 %v764_v3  ;;  %v768_v13 = vpack.c.bf16 %v118_v9, %v116_v6  ;;  %v89_v15 = vld [vmem:[%s1081_s2] sm:$0xff]  ;;  %v91_v16 = vld [vmem:[%s1081_s2 + $0x10] sm:$0xff] }
   0x7   :  { %767 = vmatpush1.bf16.msra.mxu0 %v766_v8  ;;  %v770_v14 = vpack.c.bf16 %v58_v11, %v56_v10  ;;  %121 = vperm.xlu0 %804, %v89_v15   ;;  %v90_v17 = vld [vmem:[%s1081_s2 + $0x8] sm:$0xff]  ;;  %v81_v18 = vld [vmem:[%s1080_s1] sm:$0xff]  ;;  %v92_v19 = vld [vmem:[%s1081_s2 + $0x18] sm:$0xff] }
   0x8   :  { %769 = vmatprep.subr.bf16.mxu0 %v768_v13  ;;  %131 = vperm.xlu1 %805, %v91_v16   ;;  %v93_v20 = vld [vmem:[%s1081_s2 + $0x20] sm:$0xff]  ;;  %v82_v21 = vld [vmem:[%s1080_s1 + $0x8] sm:$0xff]  ;;  %v95_v23 = vld [vmem:[%s1081_s2 + $0x30] sm:$0xff] }
   0x9   :  { %v94_v22 = vld [vmem:[%s1081_s2 + $0x28] sm:$0xff]  ;;  %v83_v24 = vld [vmem:[%s1080_s1 + $0x10] sm:$0xff]  ;;  %v96_v25 = vld [vmem:[%s1081_s2 + $0x38] sm:$0xff] }
   0xa   :  { %v101_v26 = vld [vmem:[%s1083_s4] sm:$0xff]  ;;  %v84_v27 = vld [vmem:[%s1080_s1 + $0x18] sm:$0xff]  ;;  %v102_v28 = vld [vmem:[%s1083_s4 + $0x8] sm:$0xff] }
   0xb   :  { %771 = vmatpush1.bf16.msra.mxu0 %v770_v14  ;;  %126 = vperm.xlu0 %804, %v90_v17   ;;  %v103_v29 = vld [vmem:[%s1083_s4 + $0x10] sm:$0xff]  ;;  %v85_v30 = vld [vmem:[%s1080_s1 + $0x20] sm:$0xff]  ;;  %v104_v31 = vld [vmem:[%s1083_s4 + $0x18] sm:$0xff] }
   0xc   :  { %136 = vperm.xlu1 %805, %v92_v19   ;;  %v107_v32 = vld [vmem:[%s1085_s6] sm:$0xff]  ;;  %v86_v33 = vld [vmem:[%s1080_s1 + $0x28] sm:$0xff]  ;;  %v87_v36 = vld [vmem:[%s1080_s1 + $0x30] sm:$0xff] }
   0xd   :  { %v108_v34 = vld [vmem:[%s1085_s6 + $0x8] sm:$0xff]  ;;  %v110_v35 = vld [vmem:[#allocation2] sm:$0x1]  ;;  %v88_v37 = vld [vmem:[%s1080_s1 + $0x38] sm:$0xff] }
   0xe   :  { %749 = vmatmul.mubr.msk.f32.vlgmr.msra.gmra.mrb[0].mxu0 %vm159_vm0, %v81_v18 }
   0xf   :  { %254 = vmatprep.mubr.f32.mxu0 %v886_v7  ;;  %141 = vperm.xlu0 %804, %v93_v20  }
  0x10   :  { %146 = vperm.xlu1 %805, %v94_v22  }
  0x12   :  { %750 = vmatmul.mubr.msk.f32.gmra.mrb[2].mxu0 %vm159_vm0, %v82_v21 }
  0x13   :  { %260 = vmatprep.mubr.f32.mxu0 %v886_v7  ;;  %151 = vperm.xlu0 %804, %v95_v23  }
  0x14   :  { %156 = vperm.xlu1 %805, %v96_v25  }
  0x16   :  { %751 = vmatmul.mubr.msk.f32.gmra.mrb[4].mxu0 %vm159_vm0, %v83_v24 }
  0x17   :  { %266 = vmatprep.mubr.f32.mxu0 %v886_v7  ;;  %363 = vperm.xlu0 %804, %v101_v26  }
  0x18   :  { %368 = vperm.xlu1 %805, %v102_v28  }
  0x1a   :  { %752 = vmatmul.mubr.msk.f32.gmra.mrb[6].mxu0 %vm159_vm0, %v84_v27 }
  0x1b   :  { %272 = vmatprep.mubr.f32.mxu0 %v886_v7  ;;  %373 = vperm.xlu0 %804, %v103_v29  }
  0x1c   :  { %378 = vperm.xlu1 %805, %v104_v31  }
  0x1e   :  { %753 = vmatmul.mubr.msk.f32.gmra.mrb[8].mxu0 %vm159_vm0, %v85_v30 }
  0x1f   :  { %278 = vmatprep.mubr.f32.mxu0 %v886_v7  ;;  %517 = vperm.xlu0 %804, %v107_v32  }
  0x20   :  { %522 = vperm.xlu1 %805, %v108_v34  }
  0x22   :  { %754 = vmatmul.mubr.msk.f32.gmra.mrb[10].mxu0 %vm159_vm0, %v86_v33 }
  0x23   :  { %284 = vmatprep.mubr.f32.mxu0 %v886_v7  ;;  %626 = vperm.xlu0 %804, %v110_v35  }
  0x26   :  { %755 = vmatmul.mubr.msk.f32.gmra.mrb[12].mxu0 %vm159_vm0, %v87_v36 }
  0x27   :  { %290 = vmatprep.mubr.f32.mxu0 %v886_v7 }
  0x2a   :  { %756 = vmatmul.mubr.msk.f32.gmra.mrb[14].mxu0 %vm159_vm0, %v88_v37 }
  0x2b   :  { %701 = vmatprep.mubr.f32.mxu0 %v886_v7 }
  0x86   :  { %v122_v38 = vpop.permute.xlu0 %121 }
  0x87   :  { %v132_v49 = vpop.permute.xlu1 %131 }
  0x8a   :  { %v127_v44 = vpop.permute.xlu0 %126 }
  0x8b   :  { %v137_v58 = vpop.permute.xlu1 %136 }
  0x8e   :  { %v142_v3 = vpop.permute.xlu0 %141 }
  0x8f   :  { %v147_v15 = vpop.permute.xlu1 %146 }
  0x92   :  { %v152_v30 = vpop.permute.xlu0 %151 }
  0xe1   :  { %v250_v39 = vpop.f32.mrb[0].mxu0 }
  0xe2   :  { %v251_v40 = vadd.f32 %v250_v39, %v122_v38  ;;  %v252_v41 = vpop.f32.mrb[1].mxu0 }
  0xe3   :  { %v253_v42 = vadd.f32 %v252_v41, %v122_v38 }
  0xe4   :  { %v297_v43 = vmul.f32 0.5, %v251_v40 }
  0xe5   :  { %v298_v45 = vmul.f32 0.5, %v253_v42  ;;  %v256_v46 = vpop.f32.mrb[2].mxu0 }
  0xe6   :  { %806 = vtanh.f32 %v297_v43  ;;  %v257_v47 = vadd.f32 %v256_v46, %v127_v44  ;;  %v258_v48 = vpop.f32.mrb[3].mxu0  ;;  %v157_v43 = vpop.permute.xlu1 %156 }
  0xe7   :  { %808 = vtanh.f32 %v298_v45  ;;  %v259_v50 = vadd.f32 %v258_v48, %v127_v44 }
  0xe8   :  { %v299_v51 = vmul.f32 0.5, %v257_v47 }
  0xe9   :  { %v300_v52 = vmul.f32 0.5, %v259_v50  ;;  %v262_v53 = vpop.f32.mrb[4].mxu0 }
  0xea   :  { %810 = vtanh.f32 %v299_v51  ;;  %v263_v54 = vadd.f32 %v262_v53, %v132_v49  ;;  %v264_v55 = vpop.f32.mrb[5].mxu0 }
  0xeb   :  { %812 = vtanh.f32 %v300_v52  ;;  %v265_v56 = vadd.f32 %v264_v55, %v132_v49 }
  0xec   :  { %v301_v57 = vmul.f32 0.5, %v263_v54 }
  0xed   :  { %v302_v59 = vmul.f32 0.5, %v265_v56  ;;  %v268_v60 = vpop.f32.mrb[6].mxu0 }
  0xee   :  { %814 = vtanh.f32 %v301_v57  ;;  %v269_v61 = vadd.f32 %v268_v60, %v137_v58  ;;  %v270_v62 = vpop.f32.mrb[7].mxu0 }
  0xef   :  { %816 = vtanh.f32 %v302_v59  ;;  %v271_v63 = vadd.f32 %v270_v62, %v137_v58 }
  0xf0   :  { %v807_v0 = vpop.eup %806  ;;  %v303_v1 = vmul.f32 0.5, %v269_v61 }
  0xf1   :  { %v809_v2 = vpop.eup %808  ;;  %v304_v4 = vmul.f32 0.5, %v271_v63  ;;  %v274_v5 = vpop.f32.mrb[8].mxu0  ;;  %v329_v10 = vadd.f32 1.0, %v807_v0 }
  0xf2   :  { %818 = vtanh.f32 %v303_v1  ;;  %v275_v6 = vadd.f32 %v274_v5, %v142_v3  ;;  %v276_v8 = vpop.f32.mrb[9].mxu0  ;;  %v330_v13 = vadd.f32 1.0, %v809_v2 }
  0xf3   :  { %820 = vtanh.f32 %v304_v4  ;;  %v277_v9 = vadd.f32 %v276_v8, %v142_v3  ;;  %v345_v23 = vmul.f32 0.5, %v329_v10 }
  0xf4   :  { %v811_v11 = vpop.eup %810  ;;  %v305_v12 = vmul.f32 0.5, %v275_v6  ;;  %v346_v27 = vmul.f32 0.5, %v330_v13 }
  0xf5   :  { %v813_v14 = vpop.eup %812  ;;  %v306_v16 = vmul.f32 0.5, %v277_v9  ;;  %v280_v17 = vpop.f32.mrb[10].mxu0  ;;  %v331_v18 = vadd.f32 1.0, %v811_v11 }
  0xf6   :  { %822 = vtanh.f32 %v305_v12  ;;  %v281_v19 = vadd.f32 %v280_v17, %v147_v15  ;;  %v282_v20 = vpop.f32.mrb[11].mxu0  ;;  %v332_v21 = vadd.f32 1.0, %v813_v14 }
  0xf7   :  { %824 = vtanh.f32 %v306_v16  ;;  %v283_v22 = vadd.f32 %v282_v20, %v147_v15  ;;  %v347_v24 = vmul.f32 0.5, %v331_v18 }
  0xf8   :  { %v815_v25 = vpop.eup %814  ;;  %v307_v26 = vmul.f32 0.5, %v281_v19  ;;  %v348_v28 = vmul.f32 0.5, %v332_v21 }
  0xf9   :  { %v817_v29 = vpop.eup %816  ;;  %v308_v31 = vmul.f32 0.5, %v283_v22  ;;  %v286_v32 = vpop.f32.mrb[12].mxu0  ;;  %v774_v33 = vpack.c.bf16 %v347_v24, %v345_v23  ;;  %v333_v37 = vadd.f32 1.0, %v815_v25  ;;  %v97_v24 = vld [vmem:[%s1082_s3] sm:$0xff]  ;;  %v98_v25 = vld [vmem:[%s1082_s3 + $0x8] sm:$0xff] }
  0xfa   :  { %826 = vtanh.f32 %v307_v26  ;;  %v287_v34 = vadd.f32 %v286_v32, %v152_v30  ;;  %v288_v35 = vpop.f32.mrb[13].mxu0  ;;  %v772_v36 = vpack.c.bf16 %v348_v28, %v346_v27  ;;  %v334_v40 = vadd.f32 1.0, %v817_v29  ;;  %v99_v26 = vld [vmem:[%s1082_s3 + $0x10] sm:$0xff]  ;;  %v100_v27 = vld [vmem:[%s1082_s3 + $0x18] sm:$0xff]  ;;  %v364_v28 = vpop.permute.xlu0 %363 }
  0xfb   :  { %828 = vtanh.f32 %v308_v31  ;;  %v289_v38 = vadd.f32 %v288_v35, %v152_v30  ;;  %v349_v50 = vmul.f32 0.5, %v333_v37 }
  0xfc   :  { %v819_v39 = vpop.eup %818  ;;  %v309_v41 = vmul.f32 0.5, %v287_v34  ;;  %773 = vmatprep.subr.bf16.mxu1 %v772_v36  ;;  %v350_v54 = vmul.f32 0.5, %v334_v40  ;;  %v369_v34 = vpop.permute.xlu1 %368 }
  0xfd   :  { %v821_v42 = vpop.eup %820  ;;  %v335_v44 = vadd.f32 1.0, %v819_v39  ;;  %v310_v45 = vmul.f32 0.5, %v289_v38  ;;  %v292_v46 = vpop.f32.mrb[14].mxu0  ;;  %775 = vmatpush1.bf16.msra.mxu1 %v774_v33 }
  0xfe   :  { %v336_v47 = vadd.f32 1.0, %v821_v42  ;;  %830 = vtanh.f32 %v309_v41  ;;  %v293_v48 = vadd.f32 %v292_v46, %v157_v43  ;;  %v294_v49 = vpop.f32.mrb[15].mxu0  ;;  %v374_v41 = vpop.permute.xlu0 %373 }
  0xff   :  { %v351_v51 = vmul.f32 0.5, %v335_v44  ;;  %832 = vtanh.f32 %v310_v45  ;;  %v295_v52 = vadd.f32 %v294_v49, %v157_v43 }
 0x100   :  { %v823_v53 = vpop.eup %822  ;;  %v352_v55 = vmul.f32 0.5, %v336_v47  ;;  %v311_v56 = vmul.f32 0.5, %v293_v48  ;;  %v379_v48 = vpop.permute.xlu1 %378 }
 0x101   :  { %v825_v57 = vpop.eup %824  ;;  %v312_v58 = vmul.f32 0.5, %v295_v52  ;;  %v778_v59 = vpack.c.bf16 %v351_v51, %v349_v50  ;;  %v337_v61 = vadd.f32 1.0, %v823_v53 }
 0x102   :  { %834 = vtanh.f32 %v311_v56  ;;  %v776_v60 = vpack.c.bf16 %v352_v55, %v350_v54  ;;  %v338_v63 = vadd.f32 1.0, %v825_v57 }
 0x103   :  { %836 = vtanh.f32 %v312_v58  ;;  %v353_v3 = vmul.f32 0.5, %v337_v61 }
 0x104   :  { %v827_v62 = vpop.eup %826  ;;  %777 = vmatprep.subr.bf16.mxu1 %v776_v60  ;;  %v354_v6 = vmul.f32 0.5, %v338_v63 }
 0x105   :  { %v829_v0 = vpop.eup %828  ;;  %v339_v1 = vadd.f32 1.0, %v827_v62  ;;  %779 = vmatpush1.bf16.msra.mxu1 %v778_v59 }
 0x106   :  { %v340_v2 = vadd.f32 1.0, %v829_v0 }
 0x107   :  { %v355_v4 = vmul.f32 0.5, %v339_v1 }
 0x108   :  { %v831_v5 = vpop.eup %830  ;;  %v356_v8 = vmul.f32 0.5, %v340_v2 }
 0x109   :  { %v833_v9 = vpop.eup %832  ;;  %v782_v10 = vpack.c.bf16 %v355_v4, %v353_v3  ;;  %v341_v12 = vadd.f32 1.0, %v831_v5 }
 0x10a   :  { %v780_v11 = vpack.c.bf16 %v356_v8, %v354_v6  ;;  %v342_v14 = vadd.f32 1.0, %v833_v9 }
 0x10b   :  { %v357_v18 = vmul.f32 0.5, %v341_v12 }
 0x10c   :  { %v835_v13 = vpop.eup %834  ;;  %781 = vmatprep.subr.bf16.mxu1 %v780_v11  ;;  %v358_v20 = vmul.f32 0.5, %v342_v14 }
 0x10d   :  { %v837_v15 = vpop.eup %836  ;;  %v343_v16 = vadd.f32 1.0, %v835_v13  ;;  %783 = vmatpush1.bf16.msra.mxu1 %v782_v10 }
 0x10e   :  { %v344_v17 = vadd.f32 1.0, %v837_v15 }
 0x10f   :  { %v359_v19 = vmul.f32 0.5, %v343_v16 }
 0x110   :  { %v360_v21 = vmul.f32 0.5, %v344_v17 }
 0x111   :  { %v786_v22 = vpack.c.bf16 %v359_v19, %v357_v18 }
 0x112   :  { %v784_v23 = vpack.c.bf16 %v360_v21, %v358_v20  ;;  %v105_v21 = vld [vmem:[%s1084_s5] sm:$0xff] }
 0x114   :  { %785 = vmatprep.subr.bf16.mxu1 %v784_v23  ;;  %v518_v23 = vpop.permute.xlu0 %517 }
 0x115   :  { %787 = vmatpush1.bf16.msra.mxu1 %v786_v22  ;;  %v106_v22 = vld [vmem:[%s1084_s5 + $0x8] sm:$0xff] }
 0x118   :  { %757 = vmatmul.mubr.msk.f32.vlgmr.msra.gmra.mrb[0].mxu1 %vm381_vm1, %v97_v24 }
 0x119   :  { %464 = vmatprep.mubr.f32.mxu1 %v886_v7 }
 0x11c   :  { %758 = vmatmul.mubr.msk.f32.gmra.mrb[2].mxu1 %vm381_vm1, %v98_v25 }
 0x11d   :  { %470 = vmatprep.mubr.f32.mxu1 %v886_v7 }
 0x120   :  { %759 = vmatmul.mubr.msk.f32.gmra.mrb[4].mxu1 %vm381_vm1, %v99_v26 }
 0x121   :  { %476 = vmatprep.mubr.f32.mxu1 %v886_v7 }
 0x124   :  { %760 = vmatmul.mubr.msk.f32.gmra.mrb[6].mxu1 %vm381_vm1, %v100_v27 }
 0x125   :  { %595 = vmatprep.mubr.f32.mxu1 %v886_v7 }
 0x1eb   :  { %v460_v29 = vpop.f32.mrb[0].mxu1 }
 0x1ec   :  { %v461_v30 = vadd.f32 %v460_v29, %v364_v28  ;;  %v462_v31 = vpop.f32.mrb[1].mxu1  ;;  %v523_v29 = vpop.permute.xlu1 %522 }
 0x1ed   :  { %v463_v32 = vadd.f32 %v462_v31, %v364_v28 }
 0x1ee   :  { %v483_v33 = vmul.f32 0.5, %v461_v30 }
 0x1ef   :  { %v484_v35 = vmul.f32 0.5, %v463_v32  ;;  %v466_v36 = vpop.f32.mrb[2].mxu1 }
 0x1f0   :  { %838 = vtanh.f32 %v483_v33  ;;  %v467_v37 = vadd.f32 %v466_v36, %v369_v34  ;;  %v468_v38 = vpop.f32.mrb[3].mxu1 }
 0x1f1   :  { %840 = vtanh.f32 %v484_v35  ;;  %v469_v39 = vadd.f32 %v468_v38, %v369_v34 }
 0x1f2   :  { %v485_v40 = vmul.f32 0.5, %v467_v37 }
 0x1f3   :  { %v486_v42 = vmul.f32 0.5, %v469_v39  ;;  %v472_v43 = vpop.f32.mrb[4].mxu1 }
 0x1f4   :  { %842 = vtanh.f32 %v485_v40  ;;  %v473_v44 = vadd.f32 %v472_v43, %v374_v41  ;;  %v474_v45 = vpop.f32.mrb[5].mxu1 }
 0x1f5   :  { %844 = vtanh.f32 %v486_v42  ;;  %v475_v46 = vadd.f32 %v474_v45, %v374_v41 }
 0x1f6   :  { %v487_v47 = vmul.f32 0.5, %v473_v44 }
 0x1f7   :  { %v488_v49 = vmul.f32 0.5, %v475_v46  ;;  %v478_v50 = vpop.f32.mrb[6].mxu1 }
 0x1f8   :  { %846 = vtanh.f32 %v487_v47  ;;  %v479_v51 = vadd.f32 %v478_v50, %v379_v48  ;;  %v480_v52 = vpop.f32.mrb[7].mxu1  ;;  %v109_v50 = vld [vmem:[%s1086_s7] sm:$0x1] }
 0x1f9   :  { %848 = vtanh.f32 %v488_v49  ;;  %v481_v53 = vadd.f32 %v480_v52, %v379_v48 }
 0x1fa   :  { %v839_v54 = vpop.eup %838  ;;  %v489_v55 = vmul.f32 0.5, %v479_v51  ;;  %v629_v51 = vlaneseq }
 0x1fb   :  { %v841_v56 = vpop.eup %840  ;;  %v490_v57 = vmul.f32 0.5, %v481_v53  ;;  %v499_v58 = vadd.f32 1.0, %v839_v54  ;;  %v888_v53 = vmov 1966171168  }
 0x1fc   :  { %850 = vtanh.f32 %v489_v55  ;;  %v500_v60 = vadd.f32 1.0, %v841_v56  ;;  %v630_v52 = vshrl.u32 %v629_v51, 7  ;;  %v712_v54 = vunpack.c.l.s4 %v888_v53  ;;  %v627_v56 = vpop.permute.xlu0 %626 }
 0x1fd   :  { %852 = vtanh.f32 %v490_v57  ;;  %v507_v0 = vmul.f32 0.5, %v499_v58  ;;  %vm728_vm3 = vcmp.lt.s32.totalorder %v629_v51, 256 }
 0x1fe   :  { %v843_v59 = vpop.eup %842  ;;  %v508_v3 = vmul.f32 0.5, %v500_v60  ;;  %v631_v55 = vsub.s32 0, %v630_v52  ;;  %v713_v57 = vunpack.c.0.s8 %v712_v54 }
 0x1ff   :  { %v845_v61 = vpop.eup %844  ;;  %v501_v62 = vadd.f32 1.0, %v843_v59 }
 0x200   :  { %v502_v63 = vadd.f32 1.0, %v845_v61  ;;  %v632_v58 = vrot.slane %v627_v56, %v631_v55 }
 0x201   :  { %v509_v1 = vmul.f32 0.5, %v501_v62 }
 0x202   :  { %v847_v2 = vpop.eup %846  ;;  %v510_v4 = vmul.f32 0.5, %v502_v63  ;;  %v716_v63 = vsub.s32 %v713_v57, %v630_v52 }
 0x203   :  { %v849_v5 = vpop.eup %848  ;;  %v790_v6 = vpack.c.bf16 %v509_v1, %v507_v0  ;;  %v503_v9 = vadd.f32 1.0, %v847_v2 }
 0x204   :  { %v788_v8 = vpack.c.bf16 %v510_v4, %v508_v3  ;;  %v504_v11 = vadd.f32 1.0, %v849_v5 }
 0x205   :  { %v511_v15 = vmul.f32 0.5, %v503_v9 }
 0x206   :  { %v851_v10 = vpop.eup %850  ;;  %789 = vmatprep.subr.bf16.mxu1 %v788_v8  ;;  %v512_v17 = vmul.f32 0.5, %v504_v11 }
 0x207   :  { %v853_v12 = vpop.eup %852  ;;  %v505_v13 = vadd.f32 1.0, %v851_v10  ;;  %791 = vmatpush1.bf16.msra.mxu1 %v790_v6 }
 0x208   :  { %v506_v14 = vadd.f32 1.0, %v853_v12 }
 0x209   :  { %v513_v16 = vmul.f32 0.5, %v505_v13 }
 0x20a   :  { %v514_v18 = vmul.f32 0.5, %v506_v14 }
 0x20b   :  { %v794_v19 = vpack.c.bf16 %v513_v16, %v511_v15 }
 0x20c   :  { %v792_v20 = vpack.c.bf16 %v514_v18, %v512_v17 }
 0x20e   :  { %793 = vmatprep.subr.bf16.mxu1 %v792_v20 }
 0x20f   :  { %795 = vmatpush1.bf16.msra.mxu1 %v794_v19 }
 0x212   :  { %761 = vmatmul.mubr.msk.f32.vlgmr.msra.gmra.mrb[8].mxu1 %vm159_vm0, %v105_v21 }
 0x213   :  { %601 = vmatprep.mubr.f32.mxu1 %v886_v7 }
 0x216   :  { %762 = vmatmul.mubr.msk.f32.gmra.mrb[10].mxu1 %vm159_vm0, %v106_v22 }
 0x2e5   :  { %v597_v24 = vpop.f32.mrb[8].mxu1 }
 0x2e6   :  { %v598_v25 = vadd.f32 %v597_v24, %v518_v23  ;;  %v599_v26 = vpop.f32.mrb[9].mxu1 }
 0x2e7   :  { %v600_v27 = vadd.f32 %v599_v26, %v518_v23 }
 0x2e8   :  { %v608_v28 = vmul.f32 0.5, %v598_v25 }
 0x2e9   :  { %v609_v30 = vmul.f32 0.5, %v600_v27  ;;  %v603_v31 = vpop.f32.mrb[10].mxu1 }
 0x2ea   :  { %854 = vtanh.f32 %v608_v28  ;;  %v604_v32 = vadd.f32 %v603_v31, %v523_v29  ;;  %v605_v33 = vpop.f32.mrb[11].mxu1 }
 0x2eb   :  { %856 = vtanh.f32 %v609_v30  ;;  %v606_v7 = vadd.f32 %v605_v33, %v523_v29 }
 0x2ec   :  { %v610_v34 = vmul.f32 0.5, %v604_v32 }
 0x2ed   :  { %v611_v35 = vmul.f32 0.5, %v606_v7 }
 0x2ee   :  { %858 = vtanh.f32 %v610_v34 }
 0x2ef   :  { %860 = vtanh.f32 %v611_v35 }
 0x2f4   :  { %v855_v36 = vpop.eup %854 }
 0x2f5   :  { %v857_v37 = vpop.eup %856  ;;  %v616_v38 = vadd.f32 1.0, %v855_v36 }
 0x2f6   :  { %v617_v40 = vadd.f32 1.0, %v857_v37 }
 0x2f7   :  { %v620_v44 = vmul.f32 0.5, %v616_v38 }
 0x2f8   :  { %v859_v39 = vpop.eup %858  ;;  %v621_v46 = vmul.f32 0.5, %v617_v40 }
 0x2f9   :  { %v861_v41 = vpop.eup %860  ;;  %v618_v42 = vadd.f32 1.0, %v859_v39 }
 0x2fa   :  { %v619_v43 = vadd.f32 1.0, %v861_v41 }
 0x2fb   :  { %v622_v45 = vmul.f32 0.5, %v618_v42 }
 0x2fc   :  { %v623_v47 = vmul.f32 0.5, %v619_v43 }
 0x2fd   :  { %v798_v48 = vpack.c.bf16 %v622_v45, %v620_v44 }
 0x2fe   :  { %v796_v49 = vpack.c.bf16 %v623_v47, %v621_v46 }
 0x300   :  { %797 = vmatprep.subr.bf16.mxu0 %v796_v49 }
 0x301   :  { %799 = vmatpush1.bf16.msra.mxu0 %v798_v48 }
 0x304   :  { %763 = vmatmul.mubr.msk.f32.vlgmr.msra.gmra.mrb[16].mxu0 %vm633_vm2, %v109_v50 }
 0x3d7   :  { %v703_v59 = vpop.f32.mrb[16].mxu0 }
 0x3d8   :  { %v704_v60 = vadd.f32 %v703_v59, %v632_v58  ;;  %v705_v61 = vpop.f32.mrb[17].mxu0 }
 0x3d9   :  { %v706_v62 = vadd.f32 %v705_v61, %v632_v58 }
 0x3db   :  { %v710_v0 = vcombine.low %v704_v60, %v706_v62 }
 0x3dd   :  { %v717_v1 = vrot.slane %v710_v0, %v716_v63 }
 0x3df   :  { %v724_v2 = vrot.slane %v717_v1, %v716_v63 }
 0x3e1   :  { %730 = vst.msk [vmem:[#allocation4] sm:$0x3] %vm728_vm3, %v724_v2 }
 0x3e2   :  { %735 = vsyncadd [#allocation5], 16  ;;  %s889_s7 = smov [#allocation4]  }
 0x3e3   :  { %s737_s23 = sshll.u32 %s889_s7, 4  ;;  %s738_s23 = int_to_ptr.vmem [resolvable:$true] %s737_s23 }
 0x3e4   :  { %s862_s0 = scalar_lea.vmem %s738_s23, 16  ;;  %s866_s24 = scalar_lea.vmem %s738_s23, 32 }
 0x3e5   :  { %p863_p0 = scmp.ne.s32.totalorder %s738_s23, %s862_s0  ;;  %p867_p1 = scmp.lt.s32.totalorder %s738_s23, %s738_s23 }
 0x3e6   :  { %p868_p2 = scmp.lt.s32.totalorder %s866_s24, %s862_s0 }
 0x3e8   :  { %p869_p3 = por %p868_p2, %p867_p1 }
 0x3ea   :  { %p870_p4 = pnand %p869_p3, %p863_p0 }
 0x3ec   :  { %873 = shalt.err (!%p870_p4)
}
 0x3ed   :  { %s874_s27 = scalar_lea.hbm %s1088_s9, 16 }
 0x3ee   :  { %p875_p5 = scmp.ne.s32.totalorder %s1088_s9, %s874_s27  ;;  %p878_p6 = scmp.lt.u32.totalorder %s874_s27, %s1088_s9 }
 0x3f0   :  { %p880_p7 = pnand %p878_p6, %p875_p5 }
 0x3f2   :  { %883 = shalt.err (!%p880_p7)
}
 0x3f3   :  { %740 = dma.vmem_to_hbm [thread:$0]  %s738_s23, 16, %s1088_s9, [#allocation5]  }
 0x3f4   :  { %884 = dma.done.wait [#allocation5], 32  }
 0x3f5   :  { %885 = vsyncadd [#allocation5], 4294967264 }
 0x3f6   :  { %744 = vsyncpa [#allocation5], 1 }

</bundles_post_ra>
